<compile_context>
chip_gen: v7x
topology: tpu7x:2x2x1
jax: 0.10.0
libtpu: 0.0.40
codegen_flags: <defaults>
</compile_context>

<pallas_src>
import functools

import jax
import jax.numpy as jnp
import numpy as np
from jax import lax
from jax.experimental import pallas as pl
from jax.experimental.pallas import tpu as pltpu

LEAKY_SLOPE = 0.01  # default negative_slope of nn.LeakyReLU / F.leaky_relu
BN_EPS = 1e-5       # default eps of nn.BatchNorm2d


def _leaky(x):
    # max(x, a*x) == leaky_relu(x, a) for 0 < a < 1  (one vmax, no cmp+select)
    return jnp.maximum(x, LEAKY_SLOPE * x)


def _round_up(x, m):
    return (x + m - 1) // m * m


def _tap_masks(H, W, B):
    """(9, B*H*W) f32 {0,1} validity mask per 3x3 tap, tiled over B images."""
    hh, ww = np.meshgrid(np.arange(H), np.arange(W), indexing="ij")
    masks = np.empty((9, H * W), np.float32)
    for k in range(9):
        oy, ox = k // 3 - 1, k % 3 - 1
        valid = ((hh + oy >= 0) & (hh + oy < H) &
                 (ww + ox >= 0) & (ww + ox < W))
        masks[k] = valid.reshape(-1).astype(np.float32)
    return jnp.asarray(np.tile(masks, (1, B)))


# --------------------------------------------------------------------------
# In-kernel helpers
# --------------------------------------------------------------------------
def _conv3x3_im2col(t, w_b16, mask, W):
    """3x3 'same' cross-correlation as a single im2col MXU matmul.

    t:     (Mp, L)    f32 feature map(s); L = B*H*W pixels on lanes
    w_b16: (Mp, 9*Mp) bf16 weights, flat K index = tap*Mp + cin
    mask:  (9, L)     f32 {0,1} per-tap validity.  It zeroes every position a
                      circular roll could wrap across a row or image boundary,
                      so rolls are exactly equivalent to zero padding.
    """
    Mp, L = t.shape
    taps = []
    for k in range(9):
        oy, ox = k // 3 - 1, k % 3 - 1
        off = oy * W + ox
        if off == 0:                                   # center tap: no mask
            taps.append(t.astype(jnp.bfloat16))
        else:
            # s[:, p] = t[:, (p + off) % L]   (XLU lane rotation, f32 -> safe)
            s = pltpu.roll(t, (-off) % L, axis=1)
            taps.append((s * mask[k:k + 1, :]).astype(jnp.bfloat16))
    patch = jnp.concatenate(taps, axis=0)              # (9*Mp, L) bf16 patch
    return jnp.dot(w_b16, patch, preferred_element_type=jnp.float32)


# --------------------------------------------------------------------------
# Kernels (grid over groups of B images; each step handles (C, B*HW) tiles)
# --------------------------------------------------------------------------
def _stats1_kernel(x_ref, s_ref, *, spad):
    """Pass 1: per-step sum(x) and Gram x @ x.T (f32) for BN1 statistics."""
    x = x_ref[...]                                     # (depth, L) f32
    d = x.shape[0]
    gram = lax.dot_general(x, x, (((1,), (1,)), ((), ())),
                           preferred_element_type=jnp.float32)   # (d, d)
    sx = jnp.sum(x, axis=1, keepdims=True)             # (d, 1)
    pad = jnp.zeros((d, spad - d - 1), jnp.float32)
    s_ref[...] = jnp.concatenate([gram, sx, pad], axis=1)        # (d, spad)


def _mid_kernel(x_ref, w1_ref, w2_ref, w3_ref, b2_ref, sc1_ref, sh1_ref,
                mask_ref, h2_ref, s2_ref, *, W, spad):
    """Pass 2: conv1x1 + BN1 + two 3x3 convs; emit BN2 partial statistics."""
    mask = mask_ref[...]
    h1 = jnp.dot(w1_ref[...], x_ref[...].astype(jnp.bfloat16),
                 preferred_element_type=jnp.float32)             # (Mp, L)
    t = h1 * sc1_ref[...] + sh1_ref[...]                         # BN1 (b1 cancels)
    t = _conv3x3_im2col(t, w2_ref[...], mask, W) + b2_ref[...]
    t = _conv3x3_im2col(t, w3_ref[...], mask, W)                 # b3 cancels in BN2
    h2_ref[...] = t.astype(h2_ref.dtype)                         # bf16 round-trip
    Mp = t.shape[0]
    ssum = jnp.sum(t, axis=1, keepdims=True)                     # (Mp, 1)
    ssq = jnp.sum(t * t, axis=1, keepdims=True)                  # (Mp, 1)
    pad = jnp.zeros((Mp, spad - 2), jnp.float32)
    s2_ref[...] = jnp.concatenate([ssum, ssq, pad], axis=1)      # (Mp, spad)


def _out_kernel(h2_ref, inp_ref, w4_ref, b4_ref, sc2_ref, sh2_ref, o_ref):
    """Pass 3: BN2 + LeakyReLU + conv1x1 + residual + LeakyReLU."""
    t = h2_ref[...].astype(jnp.float32) * sc2_ref[...] + sh2_ref[...]   # BN2
    t = _leaky(t)
    y = jnp.dot(w4_ref[...], t.astype(jnp.bfloat16),
                preferred_element_type=jnp.float32) + b4_ref[...]
    y = y + inp_ref[...]
    o_ref[...] = _leaky(y).astype(o_ref.dtype)


# --------------------------------------------------------------------------
# Wrapper
# --------------------------------------------------------------------------
@functools.partial(jax.jit, static_argnames=("is_encoder",))
def dual_block_forward(image, inp, data, params, is_encoder=True):
    """DualBlock forward; NHWC activations in, NHWC out."""
    if is_encoder:
        x = jnp.concatenate([image, inp, data], axis=-1)
    else:
        x = jnp.concatenate([image, inp], axis=-1)

    N, H, W, depth = x.shape
    HW = H * W
    P = inp.shape[-1]
    M = params["w1"].shape[1]          # indepth
    Mp = _round_up(M, 8)               # sublane-aligned hidden width
    npix = N * HW
    f32, bf16 = jnp.float32, jnp.bfloat16

    # ---- VMEM-aware step sizing: B images per grid step, stacked on lanes ---
    try:
        phys_vmem = int(pltpu.get_tpu_info().vmem_capacity_bytes)
    except Exception:
        phys_vmem = 64 * 1024 * 1024   # v7x per-TC size: smallest generation
    # generous per-image working-set estimate (f32 x/inp double-buffered,
    # bf16 patch + h2, f32 intermediates, f32 masks)
    bytes_per_image = HW * (8 * depth + 8 * P + 52 * Mp + 80)
    budget = int(0.4 * phys_vmem)
    B = 1
    for cand in range(1, N + 1):
        if N % cand:
            continue
        if cand * bytes_per_image > budget:
            continue
        if N >= 2 and N // cand < 2:   # keep >=2 parallel steps (v7x megacore)
            continue
        B = cand
    G = N // B
    L = B * HW
    vmem_limit = int(min(int(0.8 * phys_vmem),
                         max(32 * 1024 * 1024, 6 * B * bytes_per_image)))
    cparams = pltpu.CompilerParams(
        dimension_semantics=("parallel",),
        vmem_limit_bytes=vmem_limit)

    # ---- lane-dense layouts: (G, C, B*HW), pixels (and B) on lanes ----------
    def to_lanes(a, C):
        return (a.transpose(0, 3, 1, 2)            # (N, C, H, W)
                 .reshape(G, B, C, HW)
                 .transpose(0, 2, 1, 3)            # (G, C, B, HW)
                 .reshape(G, C, L)
                 .astype(f32))

    xT = to_lanes(x, depth)
    inpT = to_lanes(inp, P)

    # ---- weights: transposed, zero-padded to Mp, MXU operands in bf16 -------
    w1f = jnp.zeros((Mp, depth), f32).at[:M].set(params["w1"].T)
    w1t = w1f.astype(bf16)
    w2t = (jnp.zeros((Mp, 9, Mp), f32)
           .at[:M, :, :M].set(jnp.transpose(params["w2"], (2, 0, 1)))
           .reshape(Mp, 9 * Mp).astype(bf16))
    w3t = (jnp.zeros((Mp, 9, Mp), f32)
           .at[:M, :, :M].set(jnp.transpose(params["w3"], (2, 0, 1)))
           .reshape(Mp, 9 * Mp).astype(bf16))
    w4t = jnp.zeros((P, Mp), f32).at[:, :M].set(params["w4"].T).astype(bf16)

    b2 = jnp.zeros((Mp, 1), f32).at[:M].set(params["b2"].reshape(M, 1))
    b4 = params["b4"].reshape(P, 1).astype(f32)
    g1 = jnp.zeros((Mp,), f32).at[:M].set(params["g1"].reshape(M))
    be1 = jnp.zeros((Mp,), f32).at[:M].set(params["be1"].reshape(M))
    g2 = jnp.zeros((Mp,), f32).at[:M].set(params["g2"].reshape(M))
    be2 = jnp.zeros((Mp,), f32).at[:M].set(params["be2"].reshape(M))

    tap_mask = _tap_masks(H, W, B)                                 # (9, L) f32

    img_spec = lambda C: pl.BlockSpec((None, C, L), lambda g: (g, 0, 0))
    full_spec = lambda a: pl.BlockSpec(a.shape, lambda g: (0,) * a.ndim)

    # ---- pass 1: sum(x) + Gram(x) per step -> BN1 statistics ---------------
    spad1 = _round_up(depth + 1, 128)
    s1 = pl.pallas_call(
        functools.partial(_stats1_kernel, spad=spad1),
        out_shape=jax.ShapeDtypeStruct((G, depth, spad1), f32),
        grid=(G,),
        in_specs=[img_spec(depth)],
        out_specs=pl.BlockSpec((None, depth, spad1), lambda g: (g, 0, 0)),
        compiler_params=cparams,
    )(xT)

    tot1 = jnp.sum(s1, axis=0)                      # (depth, spad1)
    gram = tot1[:, :depth]                          # sum_p x x^T
    sx = tot1[:, depth]                             # sum_p x
    mean1 = (w1f @ sx) / npix                       # (Mp,)  (b1 cancels in BN1)
    ex2 = jnp.einsum("md,de,me->m", w1f, gram, w1f) / npix
    var1 = jnp.maximum(ex2 - mean1 * mean1, 0.0)    # clamp: cancellation guard
    inv1 = g1 * lax.rsqrt(var1 + BN_EPS)
    sc1 = inv1.reshape(Mp, 1)
    sh1 = (be1 - mean1 * inv1).reshape(Mp, 1)

    # ---- pass 2: BN1-apply + both 3x3 im2col convs + BN2 partials ----------
    spad2 = 128
    h2, s2 = pl.pallas_call(
        functools.partial(_mid_kernel, W=W, spad=spad2),
        out_shape=(jax.ShapeDtypeStruct((G, Mp, L), bf16),
                   jax.ShapeDtypeStruct((G, Mp, spad2), f32)),
        grid=(G,),
        in_specs=[img_spec(depth), full_spec(w1t), full_spec(w2t),
                  full_spec(w3t), full_spec(b2), full_spec(sc1),
                  full_spec(sh1), full_spec(tap_mask)],
        out_specs=(pl.BlockSpec((None, Mp, L), lambda g: (g, 0, 0)),
                   pl.BlockSpec((None, Mp, spad2), lambda g: (g, 0, 0))),
        compiler_params=cparams,
    )(xT, w1t, w2t, w3t, b2, sc1, sh1, tap_mask)

    tot2 = jnp.sum(s2, axis=0)                      # (Mp, spad2)
    mean2 = tot2[:, 0] / npix
    var2 = jnp.maximum(tot2[:, 1] / npix - mean2 * mean2, 0.0)
    inv2 = g2 * lax.rsqrt(var2 + BN_EPS)
    sc2 = inv2.reshape(Mp, 1)
    sh2 = (be2 - mean2 * inv2).reshape(Mp, 1)

    # ---- pass 3: BN2 + LeakyReLU + conv1x1 + residual + LeakyReLU ----------
    yT = pl.pallas_call(
        _out_kernel,
        out_shape=jax.ShapeDtypeStruct((G, P, L), x.dtype),
        grid=(G,),
        in_specs=[img_spec(Mp), img_spec(P), full_spec(w4t), full_spec(b4),
                  full_spec(sc2), full_spec(sh2)],
        out_specs=pl.BlockSpec((None, P, L), lambda g: (g, 0, 0)),
        compiler_params=cparams,
    )(h2, inpT, w4t, b4, sc2, sh2)

    y = (yT.reshape(G, P, B, HW)
           .transpose(0, 2, 1, 3)                   # (G, B, P, HW)
           .reshape(N, P, H, W)
           .transpose(0, 2, 3, 1))                  # NHWC
    return y


# --------------------------------------------------------------------------
# Parameters and pure-XLA reference
# --------------------------------------------------------------------------
def init_params(key, depth, indepth, path_depth):
    ks = jax.random.split(key, 14)
    n = lambda k, shape, s: jax.random.normal(k, shape, jnp.float32) * s
    return {
        "w1": n(ks[0], (depth, indepth), 0.3),
        "b1": n(ks[1], (1, indepth), 0.1),
        "g1": 1.0 + n(ks[2], (1, indepth), 0.1),
        "be1": n(ks[3], (1, indepth), 0.1),
        "w2": n(ks[4], (9, indepth, indepth), 0.2),
        "b2": n(ks[5], (1, indepth), 0.1),
        "w3": n(ks[6], (9, indepth, indepth), 0.2),
        "b3": n(ks[7], (1, indepth), 0.1),
        "g2": 1.0 + n(ks[8], (1, indepth), 0.1),
        "be2": n(ks[9], (1, indepth), 0.1),
        "w4": n(ks[10], (indepth, path_depth), 0.3),
        "b4": n(ks[11], (1, path_depth), 0.1),
    }


def reference_forward(image, inp, data, params, is_encoder=True):
    """Pure-JAX (XLA) reference of the same forward pass, NHWC."""
    x = jnp.concatenate([image, inp, data], axis=-1) if is_encoder \
        else jnp.concatenate([image, inp], axis=-1)

    def conv1x1(x, w, b):
        return jnp.einsum("nhwc,co->nhwo", x, w) + b.reshape(1, 1, 1, -1)

    def conv3x3(x, w, b):
        w4 = w.reshape(3, 3, w.shape[1], w.shape[2])  # HWIO
        y = jax.lax.conv_general_dilated(
            x, w4, window_strides=(1, 1), padding="SAME",
            dimension_numbers=("NHWC", "HWIO", "NHWC"))
        return y + b.reshape(1, 1, 1, -1)

    def bn(x, g, be):
        mean = jnp.mean(x, axis=(0, 1, 2), keepdims=True)
        var = jnp.mean((x - mean) ** 2, axis=(0, 1, 2), keepdims=True)
        return ((x - mean) * jax.lax.rsqrt(var + BN_EPS)
                * g.reshape(1, 1, 1, -1) + be.reshape(1, 1, 1, -1))

    t = conv1x1(x, params["w1"], params["b1"])
    t = bn(t, params["g1"], params["be1"])
    t = conv3x3(t, params["w2"], params["b2"])
    t = conv3x3(t, params["w3"], params["b3"])
    t = bn(t, params["g2"], params["be2"])
    t = _leaky(t)
    t = conv1x1(t, params["w4"], params["b4"])
    t = t + inp
    return _leaky(t)


if __name__ == "__main__":
    # Shapes consistent with the module: is_encoder=True,
    # path_depth=4, data_depth=2  -> depth = 4 + 2 + 3 = 9, indepth = 4.
    N, H, W = 2, 16, 16
    path_depth, data_depth = 4, 2
    depth = path_depth + data_depth + 3
    indepth = depth // 2

    key = jax.random.PRNGKey(0)
    k_img, k_inp, k_data, k_par = jax.random.split(key, 4)
    image = jax.random.normal(k_img, (N, H, W, 3), jnp.float32)
    inp = jax.random.normal(k_inp, (N, H, W, path_depth), jnp.float32)
    data = jax.random.normal(k_data, (N, H, W, data_depth), jnp.float32)
    params = init_params(k_par, depth, indepth, path_depth)

    out = dual_block_forward(image, inp, data, params, is_encoder=True)
    out = jax.block_until_ready(out)

    ref = reference_forward(image, inp, data, params, is_encoder=True)
    err = float(jnp.max(jnp.abs(out - ref)))
    rel = float(jnp.linalg.norm(out - ref) / (jnp.linalg.norm(ref) + 1e-12))
    assert out.shape == (N, H, W, path_depth)
    # bf16 MXU operands / bf16 h2 round-trip (f32 accumulation & BN math)
    # -> allow a few percent of slack vs the f32 reference.
    assert err < 2e-1 and rel < 4e-2, f"max abs err {err}, rel err {rel}"

    print("KERNEL_OK")
</pallas_src>

<mosaic_0001>
module attributes {stable_mosaic.version = 11 : i64} {
  func.func @_stats1_kernel(%arg0: i32, %arg1: memref<1x9x256xf32, #tpu.memory_space<vmem>>, %arg2: memref<1x9x128xf32, #tpu.memory_space<vmem>>) attributes {dimension_semantics = [#tpu.dimension_semantics<parallel>], iteration_bounds = array<i64: 2>, scalar_prefetch = 0 : i64, scratch_operands = 0 : i64, tpu.core_type = #tpu.core_type<tc>, window_params = [{transform_indices = @transform_0, window_bounds = array<i64: 1, 9, 256>}, {transform_indices = @transform_1, window_bounds = array<i64: 1, 9, 128>}]} {
    %c0 = arith.constant 0 : index
    %c0_0 = arith.constant 0 : index
    %c0_1 = arith.constant 0 : index
    %0 = vector.load %arg1[%c0, %c0_0, %c0_1] : memref<1x9x256xf32, #tpu.memory_space<vmem>>, vector<1x9x256xf32>
    %1 = vector.shape_cast %0 : vector<1x9x256xf32> to vector<9x256xf32>
    %cst = arith.constant dense<0.000000e+00> : vector<9x9xf32>
    %2 = tpu.matmul %1, %1, %cst {dimension_numbers = #tpu.dot_dimension_numbers<[1], [1], [0], [0], [0, 0, 1, 0], [], []>} : vector<9x256xf32>, vector<9x256xf32>, vector<9x9xf32> -> vector<9x9xf32>
    %cst_2 = arith.constant dense<0.000000e+00> : vector<9xf32>
    %3 = vector.multi_reduction <add>, %1, %cst_2 [1] : vector<9x256xf32> to vector<9xf32>
    %4 = vector.shape_cast %3 : vector<9xf32> to vector<9x1xf32>
    %cst_3 = arith.constant 0.000000e+00 : f32
    %5 = vector.broadcast %cst_3 : f32 to vector<9x118xf32>
    %6 = tpu.concatenate %2, %4, %5 in 1 : vector<9x9xf32>, vector<9x1xf32>, vector<9x118xf32> -> vector<9x128xf32>
    %c0_4 = arith.constant 0 : index
    %c0_5 = arith.constant 0 : index
    %c0_6 = arith.constant 0 : index
    %7 = vector.load %arg2[%c0_4, %c0_5, %c0_6] : memref<1x9x128xf32, #tpu.memory_space<vmem>>, vector<1x9x128xf32>
    %8 = vector.shape_cast %7 : vector<1x9x128xf32> to vector<9x128xf32>
    %9 = vector.shape_cast %6 : vector<9x128xf32> to vector<1x9x128xf32>
    tpu.vector_store %arg2[%c0_4, %c0_5, %c0_6], %9 {strides = array<i32>} : memref<1x9x128xf32, #tpu.memory_space<vmem>>, vector<1x9x128xf32>,
    return
  }
  func.func @transform_0(%arg0: i32) -> (i32, i32, i32) {
    %c0_i32 = arith.constant 0 : i32
    %c0_i32_0 = arith.constant 0 : i32
    %c0_i32_1 = arith.constant 0 : i32
    return %arg0, %c0_i32, %c0_i32_0 : i32, i32, i32
  }
  func.func @transform_1(%arg0: i32) -> (i32, i32, i32) {
    %c0_i32 = arith.constant 0 : i32
    %c0_i32_0 = arith.constant 0 : i32
    %c0_i32_1 = arith.constant 0 : i32
    return %arg0, %c0_i32, %c0_i32_0 : i32, i32, i32
  }
}

module attributes {stable_mosaic.version = 11 : i64} {
  func.func @_mid_kernel(%arg0: i32, %arg1: memref<1x9x256xf32, #tpu.memory_space<vmem>>, %arg2: memref<8x9xbf16, #tpu.memory_space<vmem>>, %arg3: memref<8x72xbf16, #tpu.memory_space<vmem>>, %arg4: memref<8x72xbf16, #tpu.memory_space<vmem>>, %arg5: memref<8x1xf32, #tpu.memory_space<vmem>>, %arg6: memref<8x1xf32, #tpu.memory_space<vmem>>, %arg7: memref<8x1xf32, #tpu.memory_space<vmem>>, %arg8: memref<9x256xf32, #tpu.memory_space<vmem>>, %arg9: memref<1x8x256xbf16, #tpu.memory_space<vmem>>, %arg10: memref<1x8x128xf32, #tpu.memory_space<vmem>>) attributes {dimension_semantics = [#tpu.dimension_semantics<parallel>], iteration_bounds = array<i64: 2>, scalar_prefetch = 0 : i64, scratch_operands = 0 : i64, tpu.core_type = #tpu.core_type<tc>, window_params = [{transform_indices = @transform_0, window_bounds = array<i64: 1, 9, 256>}, {pipeline_mode = #tpu.pipeline_mode<synchronous>, transform_indices = @transform_1, window_bounds = array<i64: 8, 9>}, {pipeline_mode = #tpu.pipeline_mode<synchronous>, transform_indices = @transform_2, window_bounds = array<i64: 8, 72>}, {pipeline_mode = #tpu.pipeline_mode<synchronous>, transform_indices = @transform_3, window_bounds = array<i64: 8, 72>}, {pipeline_mode = #tpu.pipeline_mode<synchronous>, transform_indices = @transform_4, window_bounds = array<i64: 8, 1>}, {pipeline_mode = #tpu.pipeline_mode<synchronous>, transform_indices = @transform_5, window_bounds = array<i64: 8, 1>}, {pipeline_mode = #tpu.pipeline_mode<synchronous>, transform_indices = @transform_6, window_bounds = array<i64: 8, 1>}, {pipeline_mode = #tpu.pipeline_mode<synchronous>, transform_indices = @transform_7, window_bounds = array<i64: 9, 256>}, {transform_indices = @transform_8, window_bounds = array<i64: 1, 8, 256>}, {transform_indices = @transform_9, window_bounds = array<i64: 1, 8, 128>}]} {
    %c0 = arith.constant 0 : index
    %c0_0 = arith.constant 0 : index
    %0 = vector.load %arg8[%c0, %c0_0] : memref<9x256xf32, #tpu.memory_space<vmem>>, vector<9x256xf32>
    %c0_1 = arith.constant 0 : index
    %c0_2 = arith.constant 0 : index
    %1 = vector.load %arg2[%c0_1, %c0_2] : memref<8x9xbf16, #tpu.memory_space<vmem>>, vector<8x9xbf16>
    %c0_3 = arith.constant 0 : index
    %c0_4 = arith.constant 0 : index
    %c0_5 = arith.constant 0 : index
    %2 = vector.load %arg1[%c0_3, %c0_4, %c0_5] : memref<1x9x256xf32, #tpu.memory_space<vmem>>, vector<1x9x256xf32>
    %3 = vector.shape_cast %2 : vector<1x9x256xf32> to vector<9x256xf32>
    %4 = arith.truncf %3 : vector<9x256xf32> to vector<9x256xbf16>
    %cst = arith.constant dense<0.000000e+00> : vector<8x256xf32>
    %5 = tpu.matmul %1, %4, %cst {dimension_numbers = #tpu.dot_dimension_numbers<[1], [0], [0], [1], [0, 0, 1, 1], [], []>} : vector<8x9xbf16>, vector<9x256xbf16>, vector<8x256xf32> -> vector<8x256xf32>
    %c0_6 = arith.constant 0 : index
    %c0_7 = arith.constant 0 : index
    %6 = vector.load %arg6[%c0_6, %c0_7] : memref<8x1xf32, #tpu.memory_space<vmem>>, vector<8x1xf32>
    %7 = vector.broadcast %6 : vector<8x1xf32> to vector<8x256xf32>
    %8 = arith.mulf %5, %7 : vector<8x256xf32>
    %c0_8 = arith.constant 0 : index
    %c0_9 = arith.constant 0 : index
    %9 = vector.load %arg7[%c0_8, %c0_9] : memref<8x1xf32, #tpu.memory_space<vmem>>, vector<8x1xf32>
    %10 = vector.broadcast %9 : vector<8x1xf32> to vector<8x256xf32>
    %11 = arith.addf %8, %10 : vector<8x256xf32>
    %c0_10 = arith.constant 0 : index
    %c0_11 = arith.constant 0 : index
    %12 = vector.load %arg3[%c0_10, %c0_11] : memref<8x72xbf16, #tpu.memory_space<vmem>>, vector<8x72xbf16>
    %c17_i32 = arith.constant 17 : i32
    %13 = tpu.dynamic_rotate %11 by %c17_i32 dim 1 : vector<8x256xf32>, i32 -> vector<8x256xf32>
    %14 = vector.extract_strided_slice %0 {offsets = [0, 0], sizes = [1, 256], strides = [1, 1]} : vector<9x256xf32> to vector<1x256xf32>
    %15 = vector.broadcast %14 : vector<1x256xf32> to vector<8x256xf32>
    %16 = arith.mulf %13, %15 : vector<8x256xf32>
    %17 = arith.truncf %16 : vector<8x256xf32> to vector<8x256xbf16>
    %c16_i32 = arith.constant 16 : i32
    %18 = tpu.dynamic_rotate %11 by %c16_i32 dim 1 : vector<8x256xf32>, i32 -> vector<8x256xf32>
    %19 = vector.extract_strided_slice %0 {offsets = [1, 0], sizes = [1, 256], strides = [1, 1]} : vector<9x256xf32> to vector<1x256xf32>
    %20 = vector.broadcast %19 : vector<1x256xf32> to vector<8x256xf32>
    %21 = arith.mulf %18, %20 : vector<8x256xf32>
    %22 = arith.truncf %21 : vector<8x256xf32> to vector<8x256xbf16>
    %c15_i32 = arith.constant 15 : i32
    %23 = tpu.dynamic_rotate %11 by %c15_i32 dim 1 : vector<8x256xf32>, i32 -> vector<8x256xf32>
    %24 = vector.extract_strided_slice %0 {offsets = [2, 0], sizes = [1, 256], strides = [1, 1]} : vector<9x256xf32> to vector<1x256xf32>
    %25 = vector.broadcast %24 : vector<1x256xf32> to vector<8x256xf32>
    %26 = arith.mulf %23, %25 : vector<8x256xf32>
    %27 = arith.truncf %26 : vector<8x256xf32> to vector<8x256xbf16>
    %c1_i32 = arith.constant 1 : i32
    %28 = tpu.dynamic_rotate %11 by %c1_i32 dim 1 : vector<8x256xf32>, i32 -> vector<8x256xf32>
    %29 = vector.extract_strided_slice %0 {offsets = [3, 0], sizes = [1, 256], strides = [1, 1]} : vector<9x256xf32> to vector<1x256xf32>
    %30 = vector.broadcast %29 : vector<1x256xf32> to vector<8x256xf32>
    %31 = arith.mulf %28, %30 : vector<8x256xf32>
    %32 = arith.truncf %31 : vector<8x256xf32> to vector<8x256xbf16>
    %33 = arith.truncf %11 : vector<8x256xf32> to vector<8x256xbf16>
    %c255_i32 = arith.constant 255 : i32
    %34 = tpu.dynamic_rotate %11 by %c255_i32 dim 1 : vector<8x256xf32>, i32 -> vector<8x256xf32>
    %35 = vector.extract_strided_slice %0 {offsets = [5, 0], sizes = [1, 256], strides = [1, 1]} : vector<9x256xf32> to vector<1x256xf32>
    %36 = vector.broadcast %35 : vector<1x256xf32> to vector<8x256xf32>
    %37 = arith.mulf %34, %36 : vector<8x256xf32>
    %38 = arith.truncf %37 : vector<8x256xf32> to vector<8x256xbf16>
    %c241_i32 = arith.constant 241 : i32
    %39 = tpu.dynamic_rotate %11 by %c241_i32 dim 1 : vector<8x256xf32>, i32 -> vector<8x256xf32>
    %40 = vector.extract_strided_slice %0 {offsets = [6, 0], sizes = [1, 256], strides = [1, 1]} : vector<9x256xf32> to vector<1x256xf32>
    %41 = vector.broadcast %40 : vector<1x256xf32> to vector<8x256xf32>
    %42 = arith.mulf %39, %41 : vector<8x256xf32>
    %43 = arith.truncf %42 : vector<8x256xf32> to vector<8x256xbf16>
    %c240_i32 = arith.constant 240 : i32
    %44 = tpu.dynamic_rotate %11 by %c240_i32 dim 1 : vector<8x256xf32>, i32 -> vector<8x256xf32>
    %45 = vector.extract_strided_slice %0 {offsets = [7, 0], sizes = [1, 256], strides = [1, 1]} : vector<9x256xf32> to vector<1x256xf32>
    %46 = vector.broadcast %45 : vector<1x256xf32> to vector<8x256xf32>
    %47 = arith.mulf %44, %46 : vector<8x256xf32>
    %48 = arith.truncf %47 : vector<8x256xf32> to vector<8x256xbf16>
    %c239_i32 = arith.constant 239 : i32
    %49 = tpu.dynamic_rotate %11 by %c239_i32 dim 1 : vector<8x256xf32>, i32 -> vector<8x256xf32>
    %50 = vector.extract_strided_slice %0 {offsets = [8, 0], sizes = [1, 256], strides = [1, 1]} : vector<9x256xf32> to vector<1x256xf32>
    %51 = vector.broadcast %50 : vector<1x256xf32> to vector<8x256xf32>
    %52 = arith.mulf %49, %51 : vector<8x256xf32>
    %53 = arith.truncf %52 : vector<8x256xf32> to vector<8x256xbf16>
    %54 = tpu.concatenate %17, %22, %27, %32, %33, %38, %43, %48, %53 in 0 : vector<8x256xbf16>, vector<8x256xbf16>, vector<8x256xbf16>, vector<8x256xbf16>, vector<8x256xbf16>, vector<8x256xbf16>, vector<8x256xbf16>, vector<8x256xbf16>, vector<8x256xbf16> -> vector<72x256xbf16>
    %cst_12 = arith.constant dense<0.000000e+00> : vector<8x256xf32>
    %55 = tpu.matmul %12, %54, %cst_12 {dimension_numbers = #tpu.dot_dimension_numbers<[1], [0], [0], [1], [0, 0, 1, 1], [], []>} : vector<8x72xbf16>, vector<72x256xbf16>, vector<8x256xf32> -> vector<8x256xf32>
    %c0_13 = arith.constant 0 : index
    %c0_14 = arith.constant 0 : index
    %56 = vector.load %arg5[%c0_13, %c0_14] : memref<8x1xf32, #tpu.memory_space<vmem>>, vector<8x1xf32>
    %57 = vector.broadcast %56 : vector<8x1xf32> to vector<8x256xf32>
    %58 = arith.addf %55, %57 : vector<8x256xf32>
    %c0_15 = arith.constant 0 : index
    %c0_16 = arith.constant 0 : index
    %59 = vector.load %arg4[%c0_15, %c0_16] : memref<8x72xbf16, #tpu.memory_space<vmem>>, vector<8x72xbf16>
    %c17_i32_17 = arith.constant 17 : i32
    %60 = tpu.dynamic_rotate %58 by %c17_i32_17 dim 1 : vector<8x256xf32>, i32 -> vector<8x256xf32>
    %61 = vector.extract_strided_slice %0 {offsets = [0, 0], sizes = [1, 256], strides = [1, 1]} : vector<9x256xf32> to vector<1x256xf32>
    %62 = vector.broadcast %61 : vector<1x256xf32> to vector<8x256xf32>
    %63 = arith.mulf %60, %62 : vector<8x256xf32>
    %64 = arith.truncf %63 : vector<8x256xf32> to vector<8x256xbf16>
    %c16_i32_18 = arith.constant 16 : i32
    %65 = tpu.dynamic_rotate %58 by %c16_i32_18 dim 1 : vector<8x256xf32>, i32 -> vector<8x256xf32>
    %66 = vector.extract_strided_slice %0 {offsets = [1, 0], sizes = [1, 256], strides = [1, 1]} : vector<9x256xf32> to vector<1x256xf32>
    %67 = vector.broadcast %66 : vector<1x256xf32> to vector<8x256xf32>
    %68 = arith.mulf %65, %67 : vector<8x256xf32>
    %69 = arith.truncf %68 : vector<8x256xf32> to vector<8x256xbf16>
    %c15_i32_19 = arith.constant 15 : i32
    %70 = tpu.dynamic_rotate %58 by %c15_i32_19 dim 1 : vector<8x256xf32>, i32 -> vector<8x256xf32>
    %71 = vector.extract_strided_slice %0 {offsets = [2, 0], sizes = [1, 256], strides = [1, 1]} : vector<9x256xf32> to vector<1x256xf32>
    %72 = vector.broadcast %71 : vector<1x256xf32> to vector<8x256xf32>
    %73 = arith.mulf %70, %72 : vector<8x256xf32>
    %74 = arith.truncf %73 : vector<8x256xf32> to vector<8x256xbf16>
    %c1_i32_20 = arith.constant 1 : i32
    %75 = tpu.dynamic_rotate %58 by %c1_i32_20 dim 1 : vector<8x256xf32>, i32 -> vector<8x256xf32>
    %76 = vector.extract_strided_slice %0 {offsets = [3, 0], sizes = [1, 256], strides = [1, 1]} : vector<9x256xf32> to vector<1x256xf32>
    %77 = vector.broadcast %76 : vector<1x256xf32> to vector<8x256xf32>
    %78 = arith.mulf %75, %77 : vector<8x256xf32>
    %79 = arith.truncf %78 : vector<8x256xf32> to vector<8x256xbf16>
    %80 = arith.truncf %58 : vector<8x256xf32> to vector<8x256xbf16>
    %c255_i32_21 = arith.constant 255 : i32
    %81 = tpu.dynamic_rotate %58 by %c255_i32_21 dim 1 : vector<8x256xf32>, i32 -> vector<8x256xf32>
    %82 = vector.extract_strided_slice %0 {offsets = [5, 0], sizes = [1, 256], strides = [1, 1]} : vector<9x256xf32> to vector<1x256xf32>
    %83 = vector.broadcast %82 : vector<1x256xf32> to vector<8x256xf32>
    %84 = arith.mulf %81, %83 : vector<8x256xf32>
    %85 = arith.truncf %84 : vector<8x256xf32> to vector<8x256xbf16>
    %c241_i32_22 = arith.constant 241 : i32
    %86 = tpu.dynamic_rotate %58 by %c241_i32_22 dim 1 : vector<8x256xf32>, i32 -> vector<8x256xf32>
    %87 = vector.extract_strided_slice %0 {offsets = [6, 0], sizes = [1, 256], strides = [1, 1]} : vector<9x256xf32> to vector<1x256xf32>
    %88 = vector.broadcast %87 : vector<1x256xf32> to vector<8x256xf32>
    %89 = arith.mulf %86, %88 : vector<8x256xf32>
    %90 = arith.truncf %89 : vector<8x256xf32> to vector<8x256xbf16>
    %c240_i32_23 = arith.constant 240 : i32
    %91 = tpu.dynamic_rotate %58 by %c240_i32_23 dim 1 : vector<8x256xf32>, i32 -> vector<8x256xf32>
    %92 = vector.extract_strided_slice %0 {offsets = [7, 0], sizes = [1, 256], strides = [1, 1]} : vector<9x256xf32> to vector<1x256xf32>
    %93 = vector.broadcast %92 : vector<1x256xf32> to vector<8x256xf32>
    %94 = arith.mulf %91, %93 : vector<8x256xf32>
    %95 = arith.truncf %94 : vector<8x256xf32> to vector<8x256xbf16>
    %c239_i32_24 = arith.constant 239 : i32
    %96 = tpu.dynamic_rotate %58 by %c239_i32_24 dim 1 : vector<8x256xf32>, i32 -> vector<8x256xf32>
    %97 = vector.extract_strided_slice %0 {offsets = [8, 0], sizes = [1, 256], strides = [1, 1]} : vector<9x256xf32> to vector<1x256xf32>
    %98 = vector.broadcast %97 : vector<1x256xf32> to vector<8x256xf32>
    %99 = arith.mulf %96, %98 : vector<8x256xf32>
    %100 = arith.truncf %99 : vector<8x256xf32> to vector<8x256xbf16>
    %101 = tpu.concatenate %64, %69, %74, %79, %80, %85, %90, %95, %100 in 0 : vector<8x256xbf16>, vector<8x256xbf16>, vector<8x256xbf16>, vector<8x256xbf16>, vector<8x256xbf16>, vector<8x256xbf16>, vector<8x256xbf16>, vector<8x256xbf16>, vector<8x256xbf16> -> vector<72x256xbf16>
    %cst_25 = arith.constant dense<0.000000e+00> : vector<8x256xf32>
    %102 = tpu.matmul %59, %101, %cst_25 {dimension_numbers = #tpu.dot_dimension_numbers<[1], [0], [0], [1], [0, 0, 1, 1], [], []>} : vector<8x72xbf16>, vector<72x256xbf16>, vector<8x256xf32> -> vector<8x256xf32>
    %103 = arith.truncf %102 : vector<8x256xf32> to vector<8x256xbf16>
    %c0_26 = arith.constant 0 : index
    %c0_27 = arith.constant 0 : index
    %c0_28 = arith.constant 0 : index
    %104 = vector.load %arg9[%c0_26, %c0_27, %c0_28] : memref<1x8x256xbf16, #tpu.memory_space<vmem>>, vector<1x8x256xbf16>
    %105 = vector.shape_cast %104 : vector<1x8x256xbf16> to vector<8x256xbf16>
    %106 = vector.shape_cast %103 : vector<8x256xbf16> to vector<1x8x256xbf16>
    tpu.vector_store %arg9[%c0_26, %c0_27, %c0_28], %106 {strides = array<i32>} : memref<1x8x256xbf16, #tpu.memory_space<vmem>>, vector<1x8x256xbf16>,
    %cst_29 = arith.constant dense<0.000000e+00> : vector<8xf32>
    %107 = vector.multi_reduction <add>, %102, %cst_29 [1] : vector<8x256xf32> to vector<8xf32>
    %108 = vector.shape_cast %107 : vector<8xf32> to vector<8x1xf32>
    %109 = arith.mulf %102, %102 : vector<8x256xf32>
    %cst_30 = arith.constant dense<0.000000e+00> : vector<8xf32>
    %110 = vector.multi_reduction <add>, %109, %cst_30 [1] : vector<8x256xf32> to vector<8xf32>
    %111 = vector.shape_cast %110 : vector<8xf32> to vector<8x1xf32>
    %cst_31 = arith.constant 0.000000e+00 : f32
    %112 = vector.broadcast %cst_31 : f32 to vector<8x126xf32>
    %113 = tpu.concatenate %108, %111, %112 in 1 : vector<8x1xf32>, vector<8x1xf32>, vector<8x126xf32> -> vector<8x128xf32>
    %c0_32 = arith.constant 0 : index
    %c0_33 = arith.constant 0 : index
    %c0_34 = arith.constant 0 : index
    %114 = vector.load %arg10[%c0_32, %c0_33, %c0_34] : memref<1x8x128xf32, #tpu.memory_space<vmem>>, vector<1x8x128xf32>
    %115 = vector.shape_cast %114 : vector<1x8x128xf32> to vector<8x128xf32>
    %116 = vector.shape_cast %113 : vector<8x128xf32> to vector<1x8x128xf32>
    tpu.vector_store %arg10[%c0_32, %c0_33, %c0_34], %116 {strides = array<i32>} : memref<1x8x128xf32, #tpu.memory_space<vmem>>, vector<1x8x128xf32>,
    return
  }
  func.func @transform_0(%arg0: i32) -> (i32, i32, i32) {
    %c0_i32 = arith.constant 0 : i32
    %c0_i32_0 = arith.constant 0 : i32
    %c0_i32_1 = arith.constant 0 : i32
    return %arg0, %c0_i32, %c0_i32_0 : i32, i32, i32
  }
  func.func @transform_1(%arg0: i32) -> (i32, i32) {
    %c0_i32 = arith.constant 0 : i32
    %c0_i32_0 = arith.constant 0 : i32
    %c0_i32_1 = arith.constant 0 : i32
    return %c0_i32, %c0_i32_0 : i32, i32
  }
  func.func @transform_2(%arg0: i32) -> (i32, i32) {
    %c0_i32 = arith.constant 0 : i32
    %c0_i32_0 = arith.constant 0 : i32
    %c0_i32_1 = arith.constant 0 : i32
    return %c0_i32, %c0_i32_0 : i32, i32
  }
  func.func @transform_3(%arg0: i32) -> (i32, i32) {
    %c0_i32 = arith.constant 0 : i32
    %c0_i32_0 = arith.constant 0 : i32
    %c0_i32_1 = arith.constant 0 : i32
    return %c0_i32, %c0_i32_0 : i32, i32
  }
  func.func @transform_4(%arg0: i32) -> (i32, i32) {
    %c0_i32 = arith.constant 0 : i32
    %c0_i32_0 = arith.constant 0 : i32
    %c0_i32_1 = arith.constant 0 : i32
    return %c0_i32, %c0_i32_0 : i32, i32
  }
  func.func @transform_5(%arg0: i32) -> (i32, i32) {
    %c0_i32 = arith.constant 0 : i32
    %c0_i32_0 = arith.constant 0 : i32
    %c0_i32_1 = arith.constant 0 : i32
    return %c0_i32, %c0_i32_0 : i32, i32
  }
  func.func @transform_6(%arg0: i32) -> (i32, i32) {
    %c0_i32 = arith.constant 0 : i32
    %c0_i32_0 = arith.constant 0 : i32
    %c0_i32_1 = arith.constant 0 : i32
    return %c0_i32, %c0_i32_0 : i32, i32
  }
  func.func @transform_7(%arg0: i32) -> (i32, i32) {
    %c0_i32 = arith.constant 0 : i32
    %c0_i32_0 = arith.constant 0 : i32
    %c0_i32_1 = arith.constant 0 : i32
    return %c0_i32, %c0_i32_0 : i32, i32
  }
  func.func @transform_8(%arg0: i32) -> (i32, i32, i32) {
    %c0_i32 = arith.constant 0 : i32
    %c0_i32_0 = arith.constant 0 : i32
    %c0_i32_1 = arith.constant 0 : i32
    return %arg0, %c0_i32, %c0_i32_0 : i32, i32, i32
  }
  func.func @transform_9(%arg0: i32) -> (i32, i32, i32) {
    %c0_i32 = arith.constant 0 : i32
    %c0_i32_0 = arith.constant 0 : i32
    %c0_i32_1 = arith.constant 0 : i32
    return %arg0, %c0_i32, %c0_i32_0 : i32, i32, i32
  }
}

module attributes {stable_mosaic.version = 11 : i64} {
  func.func @_out_kernel(%arg0: i32, %arg1: memref<1x8x256xbf16, #tpu.memory_space<vmem>>, %arg2: memref<1x4x256xf32, #tpu.memory_space<vmem>>, %arg3: memref<4x8xbf16, #tpu.memory_space<vmem>>, %arg4: memref<4x1xf32, #tpu.memory_space<vmem>>, %arg5: memref<8x1xf32, #tpu.memory_space<vmem>>, %arg6: memref<8x1xf32, #tpu.memory_space<vmem>>, %arg7: memref<1x4x256xf32, #tpu.memory_space<vmem>>) attributes {dimension_semantics = [#tpu.dimension_semantics<parallel>], iteration_bounds = array<i64: 2>, scalar_prefetch = 0 : i64, scratch_operands = 0 : i64, tpu.core_type = #tpu.core_type<tc>, window_params = [{transform_indices = @transform_0, window_bounds = array<i64: 1, 8, 256>}, {transform_indices = @transform_1, window_bounds = array<i64: 1, 4, 256>}, {pipeline_mode = #tpu.pipeline_mode<synchronous>, transform_indices = @transform_2, window_bounds = array<i64: 4, 8>}, {pipeline_mode = #tpu.pipeline_mode<synchronous>, transform_indices = @transform_3, window_bounds = array<i64: 4, 1>}, {pipeline_mode = #tpu.pipeline_mode<synchronous>, transform_indices = @transform_4, window_bounds = array<i64: 8, 1>}, {pipeline_mode = #tpu.pipeline_mode<synchronous>, transform_indices = @transform_5, window_bounds = array<i64: 8, 1>}, {transform_indices = @transform_6, window_bounds = array<i64: 1, 4, 256>}]} {
    %c0 = arith.constant 0 : index
    %c0_0 = arith.constant 0 : index
    %c0_1 = arith.constant 0 : index
    %0 = vector.load %arg1[%c0, %c0_0, %c0_1] : memref<1x8x256xbf16, #tpu.memory_space<vmem>>, vector<1x8x256xbf16>
    %1 = vector.shape_cast %0 : vector<1x8x256xbf16> to vector<8x256xbf16>
    %2 = arith.extf %1 : vector<8x256xbf16> to vector<8x256xf32>
    %c0_2 = arith.constant 0 : index
    %c0_3 = arith.constant 0 : index
    %3 = vector.load %arg5[%c0_2, %c0_3] : memref<8x1xf32, #tpu.memory_space<vmem>>, vector<8x1xf32>
    %4 = vector.broadcast %3 : vector<8x1xf32> to vector<8x256xf32>
    %5 = arith.mulf %2, %4 : vector<8x256xf32>
    %c0_4 = arith.constant 0 : index
    %c0_5 = arith.constant 0 : index
    %6 = vector.load %arg6[%c0_4, %c0_5] : memref<8x1xf32, #tpu.memory_space<vmem>>, vector<8x1xf32>
    %7 = vector.broadcast %6 : vector<8x1xf32> to vector<8x256xf32>
    %8 = arith.addf %5, %7 : vector<8x256xf32>
    %cst = arith.constant 0.00999999977 : f32
    %9 = vector.broadcast %cst : f32 to vector<8x256xf32>
    %10 = arith.mulf %9, %8 : vector<8x256xf32>
    %11 = arith.maximumf %8, %10 : vector<8x256xf32>
    %c0_6 = arith.constant 0 : index
    %c0_7 = arith.constant 0 : index
    %12 = vector.load %arg3[%c0_6, %c0_7] : memref<4x8xbf16, #tpu.memory_space<vmem>>, vector<4x8xbf16>
    %13 = arith.truncf %11 : vector<8x256xf32> to vector<8x256xbf16>
    %cst_8 = arith.constant dense<0.000000e+00> : vector<4x256xf32>
    %14 = tpu.matmul %12, %13, %cst_8 {dimension_numbers = #tpu.dot_dimension_numbers<[1], [0], [0], [1], [0, 0, 1, 1], [], []>} : vector<4x8xbf16>, vector<8x256xbf16>, vector<4x256xf32> -> vector<4x256xf32>
    %c0_9 = arith.constant 0 : index
    %c0_10 = arith.constant 0 : index
    %15 = vector.load %arg4[%c0_9, %c0_10] : memref<4x1xf32, #tpu.memory_space<vmem>>, vector<4x1xf32>
    %16 = vector.broadcast %15 : vector<4x1xf32> to vector<4x256xf32>
    %17 = arith.addf %14, %16 : vector<4x256xf32>
    %c0_11 = arith.constant 0 : index
    %c0_12 = arith.constant 0 : index
    %c0_13 = arith.constant 0 : index
    %18 = vector.load %arg2[%c0_11, %c0_12, %c0_13] : memref<1x4x256xf32, #tpu.memory_space<vmem>>, vector<1x4x256xf32>
    %19 = vector.shape_cast %18 : vector<1x4x256xf32> to vector<4x256xf32>
    %20 = arith.addf %17, %19 : vector<4x256xf32>
    %cst_14 = arith.constant 0.00999999977 : f32
    %21 = vector.broadcast %cst_14 : f32 to vector<4x256xf32>
    %22 = arith.mulf %21, %20 : vector<4x256xf32>
    %23 = arith.maximumf %20, %22 : vector<4x256xf32>
    %c0_15 = arith.constant 0 : index
    %c0_16 = arith.constant 0 : index
    %c0_17 = arith.constant 0 : index
    %24 = vector.load %arg7[%c0_15, %c0_16, %c0_17] : memref<1x4x256xf32, #tpu.memory_space<vmem>>, vector<1x4x256xf32>
    %25 = vector.shape_cast %24 : vector<1x4x256xf32> to vector<4x256xf32>
    %26 = vector.shape_cast %23 : vector<4x256xf32> to vector<1x4x256xf32>
    tpu.vector_store %arg7[%c0_15, %c0_16, %c0_17], %26 {strides = array<i32>} : memref<1x4x256xf32, #tpu.memory_space<vmem>>, vector<1x4x256xf32>,
    return
  }
  func.func @transform_0(%arg0: i32) -> (i32, i32, i32) {
    %c0_i32 = arith.constant 0 : i32
    %c0_i32_0 = arith.constant 0 : i32
    %c0_i32_1 = arith.constant 0 : i32
    return %arg0, %c0_i32, %c0_i32_0 : i32, i32, i32
  }
  func.func @transform_1(%arg0: i32) -> (i32, i32, i32) {
    %c0_i32 = arith.constant 0 : i32
    %c0_i32_0 = arith.constant 0 : i32
    %c0_i32_1 = arith.constant 0 : i32
    return %arg0, %c0_i32, %c0_i32_0 : i32, i32, i32
  }
  func.func @transform_2(%arg0: i32) -> (i32, i32) {
    %c0_i32 = arith.constant 0 : i32
    %c0_i32_0 = arith.constant 0 : i32
    %c0_i32_1 = arith.constant 0 : i32
    return %c0_i32, %c0_i32_0 : i32, i32
  }
  func.func @transform_3(%arg0: i32) -> (i32, i32) {
    %c0_i32 = arith.constant 0 : i32
    %c0_i32_0 = arith.constant 0 : i32
    %c0_i32_1 = arith.constant 0 : i32
    return %c0_i32, %c0_i32_0 : i32, i32
  }
  func.func @transform_4(%arg0: i32) -> (i32, i32) {
    %c0_i32 = arith.constant 0 : i32
    %c0_i32_0 = arith.constant 0 : i32
    %c0_i32_1 = arith.constant 0 : i32
    return %c0_i32, %c0_i32_0 : i32, i32
  }
  func.func @transform_5(%arg0: i32) -> (i32, i32) {
    %c0_i32 = arith.constant 0 : i32
    %c0_i32_0 = arith.constant 0 : i32
    %c0_i32_1 = arith.constant 0 : i32
    return %c0_i32, %c0_i32_0 : i32, i32
  }
  func.func @transform_6(%arg0: i32) -> (i32, i32, i32) {
    %c0_i32 = arith.constant 0 : i32
    %c0_i32_0 = arith.constant 0 : i32
    %c0_i32_1 = arith.constant 0 : i32
    return %arg0, %c0_i32, %c0_i32_0 : i32, i32, i32
  }
}

</mosaic_0001>

<bundles_post_ra>
// kernel: dual_block_forward.3
= control target key start
LH: loop header
LB: loop body
LE: loop exit
PB: predicated region body
PF: predicated region fallthrough
CT: control target
= control target key end

     0   :  { %s313_s6 = smov 0   ;;  %s334_s0 = inlined_call_operand.vmem [shape: f32[2,9,256], index: 0, kind: input, shape index: {}]   ;;  %s335_s1 = inlined_call_operand.vmem [shape: f32[2,9,128], index: 1, kind: output, shape index: {}]  }
   0x1 LB: > { %s268_s7 = sadd.s32 4294967295, %s301_s6   ;;  %p272_p0 = scmp.ge.s32.totalorder %s301_s6, 1  ;;  %s301_s6 = sphi %s313_s6, %s11_s6  }
   0x2   : > { %p87_p1 = scmp.lt.s32.totalorder %s301_s6, 3 }
   0x4   : > { %p88_p2 = pnand %p272_p0, %p87_p1 }
   0x5   : > { %p107_p3 = scmp.lt.s32.totalorder (!%p88_p2), %s268_s7, 1  ;;  %vm199_vm0 = vcmask (!%p88_p2), 1040384   ;;  %vm205_vm1 = vcmask (!%p88_p2), 72704   ;;  %vm208_vm2 = vcmask (!%p88_p2), 80896  }
   0x6   : > { %91 = sbr.rel (%p88_p2) target bundleno = 242 (0xf2), region = 24 }
   0xd   : > { %s337_s7 = smov (!%p107_p3, %s268_s7), 1 }
   0xe   : > { %s279_s8 = sshll.u32 %s337_s7, 5  ;;  %s280_s12 = sshll.u32 %s337_s7, 4 }
   0xf   : > { %s111_s11 = scalar_lea.vmem %s334_s0, %s279_s8  ;;  %s116_s15 = scalar_lea.vmem %s335_s1, %s280_s12 }
  0x10   : > { %v118_v0 = vld [vmem:[%s111_s11 + $0x8] sm:$0xff]  ;;  %v120_v1 = vld [vmem:[%s111_s11 + $0x18] sm:$0x1]  ;;  %v117_v2 = vld [vmem:[%s111_s11] sm:$0xff] }
  0x11   : > { %v281_v3 = vpack.c.bf16 %v120_v1, %v118_v0  ;;  %v119_v4 = vld [vmem:[%s111_s11 + $0x10] sm:$0x1]  ;;  %185 = vmatprep.mubr.f32.mxu0 %v118_v0  ;;  %190 = vmatprep.mubr.f32.mxu1 %v120_v1  ;;  %v196_v5 = vadd.f32 %v118_v0, %v117_v2  ;;  %v201_v8 = vsel %vm199_vm0, %v120_v1, 0.0 }
  0x12   : > { %v283_v6 = vpack.c.bf16 %v119_v4, %v117_v2  ;;  %v200_v7 = vsel %vm199_vm0, %v119_v4, 0.0 }
  0x13   : > { %282 = vmatprep.subr.bf16.mxu0 %v281_v3  ;;  %285 = vmatprep.subr.bf16.mxu1 %v281_v3  ;;  %v202_v9 = vadd.f32 %v201_v8, %v200_v7 }
  0x14   : > { %284 = vmatpush1.bf16.xpose.msra.mxu0 %v283_v6  ;;  %286 = vmatpush1.bf16.xpose.msra.mxu1 %v283_v6 }
  0x15   : > { %197 = vadd.xlane.f32.xlu0 %v196_v5 }
  0x19   : > { %203 = vadd.xlane.f32.xlu0 %v202_v9 }
  0x1b   : > { %186 = vmatmul.mubr.f32.vlgmr.msra.gmra.mrb[0].mxu0 %v117_v2  ;;  %191 = vmatmul.mubr.f32.vlgmr.msra.gmra.mrb[0].mxu1 %v119_v4 }
  0xa2   : > { %v198_v10 = vpop.xlane.xlu0 %197 }
  0xa6   : > { %v204_v11 = vpop.xlane.xlu0 %203 }
  0xee   : > { %v187_v12 = vpop.f32.mrb[0].mxu0  ;;  %v192_v13 = vpop.f32.mrb[0].mxu1 }
  0xef   : > { %v206_v14 = vsel %vm205_vm1, %v187_v12, %v198_v10  ;;  %v207_v15 = vsel %vm205_vm1, %v192_v13, %v204_v11  ;;  %v189_v16 = vpop.f32.mrb[1].mxu0  ;;  %v194_v17 = vpop.f32.mrb[1].mxu1 }
  0xf0   : > { %v209_v18 = vsel %vm208_vm2, %v206_v14, 0.0  ;;  %v210_v19 = vsel %vm208_vm2, %v207_v15, 0.0 }
  0xf1   : > { %211 = vst [vmem:[%s116_s15] sm:$0xff] %v209_v18  ;;  %212 = vst [vmem:[%s116_s15 + $0x8] sm:$0x1] %v210_v19 }
  0xf2 PF: > { %s11_s6 = sadd.s32 1, %s301_s6  }
  0xf3   : > { %p8_p4 = scmp.ge.s32.totalorder %s11_s6, 4  }
  0xf5   :  { %10 = sbr.rel (!%p8_p4) target bundleno = 1 (0x1), region = 54 }

// kernel: dual_block_forward.5
= control target key start
LH: loop header
LB: loop body
LE: loop exit
PB: predicated region body
PF: predicated region fallthrough
CT: control target
= control target key end

     0   :  { %s513_s21 = smov 0   ;;  %s550_s0 = inlined_call_operand.vmem [shape: bf16[2,8,256], index: 0, kind: input, shape index: {}]   ;;  %s551_s1 = inlined_call_operand.vmem [shape: f32[2,4,256], index: 1, kind: input, shape index: {}]   ;;  %s552_s2 = inlined_call_operand.vmem [shape: bf16[4,8], index: 2, kind: input, shape index: {}]   ;;  %s553_s3 = inlined_call_operand.vmem [shape: f32[4,1], index: 3, kind: input, shape index: {}]   ;;  %s554_s4 = inlined_call_operand.vmem [shape: f32[8,1], index: 4, kind: input, shape index: {}]   ;;  %s555_s5 = inlined_call_operand.vmem [shape: f32[8,1], index: 5, kind: input, shape index: {}]   ;;  %s556_s6 = inlined_call_operand.vmem [shape: f32[2,4,256], index: 6, kind: output, shape index: {}]  }
   0x1 LB: > { %s439_s22 = sadd.s32 4294967295, %s475_s21   ;;  %p443_p0 = scmp.ge.s32.totalorder %s475_s21, 1  ;;  %s475_s21 = sphi %s513_s21, %s16_s21  }
   0x2   : > { %p222_p1 = scmp.lt.s32.totalorder %s475_s21, 3 }
   0x4   : > { %p223_p2 = pnand %p443_p0, %p222_p1 }
   0x5   : > { %v276_v0 = vld [vmem:[%s554_s4] sm:$0xff] (!%p223_p2)  ;;  %v477_v1 = vmov (!%p223_p2), 0   ;;  %p257_p3 = scmp.lt.s32.totalorder (!%p223_p2), %s439_s22, 1  ;;  %vm309_vm0 = vcmask (!%p223_p2), 1043456   ;;  %vm305_vm1 = vcmask (!%p223_p2), 64512  }
   0x6   : > { %226 = sbr.rel (%p223_p2) target bundleno = 375 (0x177), region = 44  ;;  %466 = vset.pattern.permute.xlu0 (!%p223_p2), %v477_v1  ;;  %348 = vmatprep.mubr.bf16.mxu0 (!%p223_p2), %v477_v1  ;;  %v284_v2 = vld [vmem:[%s555_s5] sm:$0xff] (!%p223_p2) }
   0x7   : > { %279 = vperm.xlu0 (!%p223_p2), %466, %v276_v0   ;;  %467 = vset.pattern.permute.xlu1 (!%p223_p2), %v477_v1  ;;  %v299_v3 = vld [vmem:[%s553_s3] sm:$0xf] (!%p223_p2) }
   0x8   : > { %302 = vperm.xlu1 (!%p223_p2), %467, %v299_v3   ;;  %v296_v20 = vld [vmem:[%s552_s2] sm:$0x3] (!%p223_p2) }
   0xb   : > { %287 = vperm.xlu0 (!%p223_p2), %466, %v284_v2  }
   0xd   : > { %s558_s22 = smov (!%p257_p3, %s439_s22), 1 }
   0xe   : > { %s530_s29 = sshll.u32 %s558_s22, 3 }
   0xf   : > { %s261_s8 = scalar_lea.vmem %s550_s0, %s530_s29  ;;  %s266_s13 = scalar_lea.vmem %s551_s1, %s530_s29 }
  0x10   : > { %v273_v4 = vld [vmem:[%s261_s8] sm:$0xff]  ;;  %s271_s16 = scalar_lea.vmem %s556_s6, %s530_s29 }
  0x11   : > { %v274_v5 = vunpack.c.l.bf16 %v273_v4  ;;  %v275_v6 = vunpack.c.h.bf16 %v273_v4  ;;  %v357_v21 = vld [vmem:[%s266_s13] sm:$0xff] }
  0x12   : > { %v359_v24 = vcombine.high %v357_v21, %v357_v21 }
  0x86   : > { %v280_v7 = vpop.permute.xlu0 %279 }
  0x87   : > { %v282_v8 = vmul.f32 %v280_v7, %v274_v5  ;;  %v283_v9 = vmul.f32 %v280_v7, %v275_v6  ;;  %v303_v22 = vpop.permute.xlu1 %302 }
  0x8a   : > { %v288_v10 = vpop.permute.xlu0 %287 }
  0x8b   : > { %v290_v11 = vadd.f32 %v288_v10, %v282_v8  ;;  %v291_v12 = vadd.f32 %v288_v10, %v283_v9 }
  0x8d   : > { %v292_v13 = vmul.f32 0.01, %v290_v11  ;;  %v293_v14 = vmul.f32 0.01, %v291_v12 }
  0x8f   : > { %v294_v15 = vmax.f32 %v290_v11, %v292_v13  ;;  %v295_v16 = vmax.f32 %v291_v12, %v293_v14 }
  0x91   : > { %v298_v17 = vpack.c.bf16 %v295_v16, %v295_v16  ;;  %v297_v18 = vpack.c.bf16 %v294_v15, %v294_v15 }
  0x93   : > { %450 = vmatprep.subr.msk.bf16.mxu0 %vm309_vm0, %v298_v17  ;;  %v311_v19 = vsel %vm309_vm0, %v297_v18, 0 }
  0x94   : > { %317 = vmatpush1.bf16.msra.mxu0 %v311_v19 }
  0x97   : > { %451 = vmatmul.mubr.msk.bf16.vlgmr.msra.gmra.mrb[0].mxu0 %vm305_vm1, %v296_v20 }
 0x16a   : > { %v350_v23 = vpop.f32.mrb[0].mxu0 }
 0x16b   : > { %v351_v25 = vadd.f32 %v350_v23, %v303_v22  ;;  %v352_v26 = vpop.f32.mrb[1].mxu0 }
 0x16c   : > { %v353_v27 = vadd.f32 %v352_v26, %v303_v22  ;;  %v354_v28 = vpop.f32.mrb[2].mxu0 }
 0x16d   : > { %v361_v29 = vadd.f32 %v357_v21, %v351_v25  ;;  %v355_v30 = vpop.f32.mrb[3].mxu0 }
 0x16e   : > { %v362_v31 = vadd.f32 %v359_v24, %v353_v27 }
 0x16f   : > { %v363_v32 = vmul.f32 0.01, %v361_v29 }
 0x170   : > { %v364_v33 = vmul.f32 0.01, %v362_v31 }
 0x171   : > { %v365_v34 = vmax.f32 %v361_v29, %v363_v32 }
 0x172   : > { %v366_v35 = vmax.f32 %v362_v31, %v364_v33 }
 0x174   : > { %v369_v36 = vcombine.low %v365_v34, %v366_v35 }
 0x176   : > { %371 = vst [vmem:[%s271_s16] sm:$0xff] %v369_v36 }
 0x177 PF: > { %s16_s21 = sadd.s32 1, %s475_s21  }
 0x178   : > { %p13_p4 = scmp.ge.s32.totalorder %s16_s21, 4  }
 0x17a   :  { %15 = sbr.rel (!%p13_p4) target bundleno = 1 (0x1), region = 77 }

// kernel: dual_block_forward.4
= control target key start
LH: loop header
LB: loop body
LE: loop exit
PB: predicated region body
PF: predicated region fallthrough
CT: control target
= control target key end

     0   :  { %s1088_s30 = smov 0   ;;  %s1410_s0 = inlined_call_operand.vmem [shape: f32[2,9,256], index: 0, kind: input, shape index: {}]   ;;  %s1411_s1 = inlined_call_operand.vmem [shape: bf16[8,9], index: 1, kind: input, shape index: {}]   ;;  %s1412_s2 = inlined_call_operand.vmem [shape: bf16[8,72], index: 2, kind: input, shape index: {}]   ;;  %s1413_s3 = inlined_call_operand.vmem [shape: bf16[8,72], index: 3, kind: input, shape index: {}]   ;;  %s1414_s4 = inlined_call_operand.vmem [shape: f32[8,1], index: 4, kind: input, shape index: {}]   ;;  %s1415_s5 = inlined_call_operand.vmem [shape: f32[8,1], index: 5, kind: input, shape index: {}]   ;;  %s1416_s6 = inlined_call_operand.vmem [shape: f32[8,1], index: 6, kind: input, shape index: {}]   ;;  %s1417_s7 = inlined_call_operand.vmem [shape: f32[9,256], index: 7, kind: input, shape index: {}]   ;;  %s1418_s8 = inlined_call_operand.vmem [shape: bf16[2,8,256], index: 8, kind: output, shape index: {0}]   ;;  %s1419_s9 = inlined_call_operand.vmem [shape: f32[2,8,128], index: 9, kind: output, shape index: {1}]  }
   0x1 LB: > { %s978_s10 = sadd.s32 4294967295, %s1026_s30   ;;  %p982_p0 = scmp.ge.s32.totalorder %s1026_s30, 1  ;;  %s1026_s30 = sphi %s1088_s30, %s20_s30  }
   0x2   : > { %p290_p1 = scmp.lt.s32.totalorder %s1026_s30, 3 }
   0x4   : > { %p291_p2 = pnand %p982_p0, %p290_p1 }
   0x5   : > { %p330_p3 = scmp.lt.s32.totalorder (!%p291_p2), %s978_s10, 1  ;;  %vm360_vm0 = vcmask (!%p291_p2), 1043456   ;;  %v411_v0 = vld [vmem:[%s1415_s5] sm:$0xff] (!%p291_p2)  ;;  %v1028_v1 = vmov (!%p291_p2), 0   ;;  %vm361_vm1 = vcmask (!%p291_p2), 1044480   ;;  %v1029_v2 = vmov (!%p291_p2), 65535  }
   0x6   : > { %294 = sbr.rel (%p291_p2) target bundleno = 1128 (0x468), region = 52  ;;  %402 = vmatprep.mubr.bf16.mxu0 (!%p291_p2), %v1028_v1  ;;  %1019 = vset.pattern.permute.xlu0 (!%p291_p2), %v1028_v1  ;;  %v362_v3 = vsel (!%p291_p2), %vm360_vm0, 4294967295, %v1029_v2  ;;  %v419_v4 = vld [vmem:[%s1416_s6] sm:$0xff] (!%p291_p2)  ;;  %vm356_vm2 = vcmask (!%p291_p2), 72704   ;;  %s1030_s21 = smov (!%p291_p2), 17   ;;  %v432_v26 = vlaneseq (!%p291_p2)  ;;  %v1164_v31 = vld [vmem:[%s1417_s7 + $0x8] sm:$0xff] (!%p291_p2) }
   0x7   : > { %414 = vperm.xlu0 (!%p291_p2), %1019, %v411_v0   ;;  %680 = vmatprep.mubr.bf16.mxu1 (!%p291_p2), %v1028_v1  ;;  %v363_v7 = vsel (!%p291_p2), %vm361_vm1, %v362_v3, 0  ;;  %v349_v14 = vld [vmem:[%s1411_s1] sm:$0xf] (!%p291_p2)  ;;  %s1031_s22 = smov (!%p291_p2), 16   ;;  %s1032_s23 = smov (!%p291_p2), 1   ;;  %vm638_vm11 = vcmask (!%p291_p2), 588800  }
   0x8   : > { %s1033_s24 = smov (!%p291_p2), 15   ;;  %s1034_s25 = smov (!%p291_p2), 127   ;;  %v632_v25 = vld [vmem:[%s1414_s4] sm:$0xff] (!%p291_p2)  ;;  %v1151_v27 = vshrl.u32 (!%p291_p2), %v432_v26, 7  ;;  %v1153_v28 = vand.u32 (!%p291_p2), 127, %v432_v26  ;;  %vm887_vm12 = vcmask (!%p291_p2), 7168  }
   0x9   : > { %s1035_s26 = smov (!%p291_p2), 112   ;;  %s1036_s27 = smov (!%p291_p2), 113   ;;  %v1159_v30 = vld [vmem:[%s1417_s7] sm:$0xff] (!%p291_p2)  ;;  %vm889_vm13 = vcmask (!%p291_p2), 15360  }
   0xa   : > { %s1037_s28 = smov (!%p291_p2), 111   ;;  %v458_v29 = vsub.s32 (!%p291_p2), 1, %v1151_v27  ;;  %v439_v34 = vsub.s32 (!%p291_p2), 0, %v1151_v27  ;;  %vm453_vm3 = vcmp.lt.s32.totalorder (!%p291_p2), %v1153_v28, 16  ;;  %vm434_vm4 = vcmp.lt.s32.totalorder (!%p291_p2), %v1153_v28, 17 }
   0xb   : > { %422 = vperm.xlu0 (!%p291_p2), %1019, %v419_v4   ;;  %v496_v45 = vsub.s32 (!%p291_p2), 3, %v1151_v27  ;;  %v477_v46 = vsub.s32 (!%p291_p2), 2, %v1151_v27  ;;  %vm491_vm5 = vcmp.lt.s32.totalorder (!%p291_p2), %v1153_v28, 1  ;;  %vm472_vm6 = vcmp.lt.s32.totalorder (!%p291_p2), %v1153_v28, 15 }
   0xc   : > { %v1169_v35 = vrot.slane (!%p291_p2), %v1159_v30, %v458_v29  ;;  %v1172_v36 = vrot.slane (!%p291_p2), %v1164_v31, %v458_v29  ;;  %v1180_v41 = vrot.slane (!%p291_p2), %v1159_v30, %v439_v34  ;;  %v1185_v44 = vrot.slane (!%p291_p2), %v1164_v31, %v439_v34 }
   0xd   : > { %s1421_s10 = smov (!%p330_p3, %s978_s10), 1  ;;  %v1197_v55 = vrot.slane %v1159_v30, %v496_v45  ;;  %v1200_v56 = vrot.slane %v1164_v31, %v496_v45  ;;  %v1204_v57 = vrot.slane %v1159_v30, %v477_v46  ;;  %v517_v2 = vsub.s32 5, %v1151_v27 }
   0xe   : > { %s998_s15 = sshll.u32 %s1421_s10, 5  ;;  %vm512_vm7 = vcmp.lt.s32.totalorder %v1153_v28, 127  ;;  %vm550_vm8 = vcmp.lt.s32.totalorder %v1153_v28, 112  ;;  %v536_v34 = vsub.s32 6, %v1151_v27  ;;  %vm531_vm9 = vcmp.lt.s32.totalorder %v1153_v28, 113 }
   0xf   : > { %s334_s18 = scalar_lea.vmem %s1410_s0, %s998_s15  ;;  %vm569_vm10 = vcmp.lt.s32.totalorder %v1153_v28, 111  ;;  %v689_v28 = vld [vmem:[%s1413_s3] sm:$0xf] }
  0x10   : > { %v351_v5 = vld [vmem:[%s334_s18 + $0x8] sm:$0xff]  ;;  %v353_v6 = vld [vmem:[%s334_s18 + $0x18] sm:$0x1]  ;;  %v350_v8 = vld [vmem:[%s334_s18] sm:$0xff] }
  0x11   : > { %v355_v9 = vpack.c.bf16 %v353_v6, %v351_v5  ;;  %v352_v10 = vld [vmem:[%s334_s18 + $0x10] sm:$0x1] }
  0x12   : > { %v354_v11 = vpack.c.bf16 %v352_v10, %v350_v8  ;;  %v555_v8 = vsub.s32 7, %v1151_v27 }
  0x13   : > { %v368_v12 = vand.u32 %v363_v7, %v355_v9 }
  0x14   : > { %v365_v13 = vand.u32 %v363_v7, %v354_v11 }
  0x15   : > { %370 = vmatprep.subr.bf16.mxu0 %v368_v12 }
  0x16   : > { %371 = vmatpush1.bf16.msra.mxu0 %v365_v13 }
  0x19   : > { %988 = vmatmul.mubr.msk.bf16.vlgmr.msra.gmra.mrb[0].mxu0 %vm356_vm2, %v349_v14 }
  0x1a   : > { %861 = vmatprep.mubr.bf16.mxu0 %v1028_v1  ;;  %v1211_v1 = vrot.slane %v1164_v31, %v477_v46 }
  0x86   : > { %v415_v15 = vpop.permute.xlu0 %414 }
  0x8a   : > { %v423_v19 = vpop.permute.xlu0 %422 }
  0xec   : > { %v404_v16 = vpop.f32.mrb[0].mxu0 }
  0xed   : > { %v417_v17 = vmul.f32 %v415_v15, %v404_v16  ;;  %v406_v18 = vpop.f32.mrb[1].mxu0  ;;  %v1227_v16 = vrot.slane %v1159_v30, %v517_v2 }
  0xee   : > { %v408_v20 = vpop.f32.mrb[2].mxu0  ;;  %v418_v22 = vmul.f32 %v415_v15, %v406_v18  ;;  %v1234_v18 = vrot.slane %v1159_v30, %v555_v8 }
  0xef   : > { %v1112_v21 = vadd.f32 %v423_v19, %v417_v17  ;;  %v409_v23 = vpop.f32.mrb[3].mxu0  ;;  %v1230_v17 = vrot.slane %v1164_v31, %v517_v2  ;;  %v1282_v2 = vld [vmem:[%s1417_s7 + $0x18] ss:$0 sm:$0xff] }
  0xf0   : > { %v1118_v24 = vadd.f32 %v423_v19, %v418_v22 }
  0xf1   : > { %428 = vrot.lane.b32.xlu0 %v1112_v21, %s1030_s21  ;;  %449 = vrot.lane.b32.xlu1 %v1112_v21, %s1031_s22 }
  0xf2   : > { %v507_v27 = vpack.c.bf16 %v1118_v24, %v1118_v24 }
  0xf5   : > { %487 = vrot.lane.b32.xlu0 %v1112_v21, %s1032_s23  ;;  %451 = vrot.lane.b32.xlu1 %v1118_v24, %s1031_s22 }
  0xf9   : > { %468 = vrot.lane.b32.xlu0 %v1112_v21, %s1033_s24  ;;  %430 = vrot.lane.b32.xlu1 %v1118_v24, %s1030_s21 }
  0xfd   : > { %508 = vrot.lane.b32.xlu0 %v1112_v21, %s1034_s25  ;;  %489 = vrot.lane.b32.xlu1 %v1118_v24, %s1032_s23 }
 0x101   : > { %546 = vrot.lane.b32.xlu0 %v1112_v21, %s1035_s26  ;;  %470 = vrot.lane.b32.xlu1 %v1118_v24, %s1033_s24 }
 0x105   : > { %527 = vrot.lane.b32.xlu0 %v1112_v21, %s1036_s27  ;;  %510 = vrot.lane.b32.xlu1 %v1118_v24, %s1034_s25 }
 0x109   : > { %565 = vrot.lane.b32.xlu0 %v1112_v21, %s1037_s28  ;;  %548 = vrot.lane.b32.xlu1 %v1118_v24, %s1035_s26 }
 0x10d   : > { %635 = vperm.xlu0 %1019, %v632_v25   ;;  %529 = vrot.lane.b32.xlu1 %v1118_v24, %s1036_s27 }
 0x111   : > { %567 = vrot.lane.b32.xlu1 %v1118_v24, %s1037_s28 }
 0x163   : > { %v429_v32 = vpop.permute.xlu0 %428  ;;  %v450_v33 = vpop.permute.xlu1 %449 }
 0x167   : > { %v488_v37 = vpop.permute.xlu0 %487  ;;  %v452_v38 = vpop.permute.xlu1 %451 }
 0x168   : > { %v454_v39 = vsel %vm453_vm3, %v450_v33, %v452_v38  ;;  %v455_v40 = vsel %vm453_vm3, %v452_v38, %v450_v33  ;;  %v1241_v33 = vrot.slane %v1164_v31, %v555_v8 }
 0x169   : > { %v464_v42 = vmul.f32 %v1169_v35, %v455_v40  ;;  %v465_v43 = vmul.f32 %v1172_v36, %v454_v39 }
 0x16b   : > { %v466_v47 = vpack.c.bf16 %v464_v42, %v464_v42  ;;  %v467_v48 = vpack.c.bf16 %v465_v43, %v465_v43  ;;  %v469_v49 = vpop.permute.xlu0 %468  ;;  %v431_v50 = vpop.permute.xlu1 %430  ;;  %v506_v42 = vpack.c.bf16 %v1112_v21, %v1112_v21  ;;  %v1261_v21 = vrot.slane %v1164_v31, %v536_v34 }
 0x16c   : > { %v435_v51 = vsel %vm434_vm4, %v429_v32, %v431_v50  ;;  %v436_v52 = vsel %vm434_vm4, %v431_v50, %v429_v32 }
 0x16d   : > { %v445_v53 = vmul.f32 %v1180_v41, %v436_v52  ;;  %v446_v54 = vmul.f32 %v1185_v44, %v435_v51  ;;  %v586_v58 = vrot.slane %v466_v47, 4  ;;  %v587_v59 = vrot.slane %v467_v48, 4 }
 0x16f   : > { %v447_v60 = vpack.c.bf16 %v445_v53, %v445_v53  ;;  %v448_v61 = vpack.c.bf16 %v446_v54, %v446_v54  ;;  %v490_v62 = vpop.permute.xlu1 %489  ;;  %v509_v3 = vpop.permute.xlu0 %508 }
 0x170   : > { %v492_v63 = vsel %vm491_vm5, %v488_v37, %v490_v62  ;;  %v493_v0 = vsel %vm491_vm5, %v490_v62, %v488_v37 }
 0x171   : > { %v502_v4 = vmul.f32 %v1197_v55, %v493_v0  ;;  %v503_v5 = vmul.f32 %v1200_v56, %v492_v63  ;;  %v606_v6 = vsel %vm360_vm0, %v448_v61, %v587_v59  ;;  %v602_v7 = vsel %vm360_vm0, %v447_v60, %v586_v58  ;;  %v1277_v0 = vld [vmem:[%s1417_s7 + $0x10] ss:$0 sm:$0xff] }
 0x172   : > { %648 = vmatprep.subr.bf16.mxu1 %v606_v6 }
 0x173   : > { %v504_v9 = vpack.c.bf16 %v502_v4, %v502_v4  ;;  %v505_v10 = vpack.c.bf16 %v503_v5, %v503_v5  ;;  %649 = vmatpush1.bf16.msra.mxu1 %v602_v7  ;;  %v471_v11 = vpop.permute.xlu1 %470  ;;  %v547_v22 = vpop.permute.xlu0 %546 }
 0x174   : > { %v473_v12 = vsel %vm472_vm6, %v469_v49, %v471_v11  ;;  %v474_v13 = vsel %vm472_vm6, %v471_v11, %v469_v49  ;;  %v1258_v49 = vrot.slane %v1159_v30, %v536_v34 }
 0x175   : > { %v483_v14 = vmul.f32 %v1204_v57, %v474_v13  ;;  %v484_v15 = vmul.f32 %v1211_v1, %v473_v12  ;;  %v590_v19 = vrot.slane %v504_v9, 4  ;;  %v591_v20 = vrot.slane %v505_v10, 4 }
 0x177   : > { %v485_v23 = vpack.c.bf16 %v483_v14, %v483_v14  ;;  %v486_v25 = vpack.c.bf16 %v484_v15, %v484_v15  ;;  %v511_v26 = vpop.permute.xlu1 %510  ;;  %v528_v50 = vpop.permute.xlu0 %527 }
 0x178   : > { %v513_v29 = vsel %vm512_vm7, %v509_v3, %v511_v26  ;;  %v514_v32 = vsel %vm512_vm7, %v511_v26, %v509_v3 }
 0x179   : > { %v523_v37 = vmul.f32 %v1227_v16, %v513_v29  ;;  %v524_v38 = vmul.f32 %v1230_v17, %v514_v32  ;;  %v614_v39 = vsel %vm360_vm0, %v486_v25, %v591_v20  ;;  %v610_v40 = vsel %vm360_vm0, %v485_v23, %v590_v19 }
 0x17a   : > { %650 = vmatprep.subr.bf16.mxu1 %v614_v39 }
 0x17b   : > { %v525_v43 = vpack.c.bf16 %v523_v37, %v523_v37  ;;  %v526_v45 = vpack.c.bf16 %v524_v38, %v524_v38  ;;  %651 = vmatpush1.bf16.msra.mxu1 %v610_v40  ;;  %v549_v46 = vpop.permute.xlu1 %548  ;;  %v566_v3 = vpop.permute.xlu0 %565 }
 0x17c   : > { %v551_v47 = vsel %vm550_vm8, %v547_v22, %v549_v46  ;;  %v552_v48 = vsel %vm550_vm8, %v549_v46, %v547_v22  ;;  %v427_v22 = vld [vmem:[%s1412_s2] sm:$0xf] }
 0x17d   : > { %v594_v51 = vrot.slane %v525_v43, 4  ;;  %v595_v52 = vrot.slane %v526_v45, 4  ;;  %v561_v53 = vmul.f32 %v1234_v18, %v551_v47  ;;  %v562_v54 = vmul.f32 %v1241_v33, %v552_v48 }
 0x17f   : > { %v563_v24 = vpack.c.bf16 %v561_v53, %v561_v53  ;;  %v564_v58 = vpack.c.bf16 %v562_v54, %v562_v54  ;;  %v530_v59 = vpop.permute.xlu1 %529  ;;  %v622_v60 = vsel %vm360_vm0, %v507_v27, %v595_v52  ;;  %v618_v61 = vsel %vm360_vm0, %v506_v42, %v594_v51 }
 0x180   : > { %v532_v30 = vsel %vm531_vm9, %v528_v50, %v530_v59  ;;  %v533_v31 = vsel %vm531_vm9, %v530_v59, %v528_v50  ;;  %652 = vmatprep.subr.bf16.mxu1 %v622_v60 }
 0x181   : > { %v542_v62 = vmul.f32 %v1258_v49, %v532_v30  ;;  %v543_v63 = vmul.f32 %v1261_v21, %v533_v31  ;;  %653 = vmatpush1.bf16.msra.mxu1 %v618_v61  ;;  %v598_v4 = vrot.slane %v563_v24, 4  ;;  %v599_v5 = vrot.slane %v564_v58, 4 }
 0x183   : > { %v544_v6 = vpack.c.bf16 %v542_v62, %v542_v62  ;;  %v545_v7 = vpack.c.bf16 %v543_v63, %v543_v63  ;;  %v568_v8 = vpop.permute.xlu1 %567 }
 0x184   : > { %v570_v9 = vsel %vm569_vm10, %v566_v3, %v568_v8  ;;  %v571_v10 = vsel %vm569_vm10, %v568_v8, %v566_v3 }
 0x185   : > { %v580_v11 = vmul.f32 %v1277_v0, %v570_v9  ;;  %v581_v12 = vmul.f32 %v1282_v2, %v571_v10  ;;  %v630_v13 = vsel %vm360_vm0, %v545_v7, %v599_v5  ;;  %v626_v14 = vsel %vm360_vm0, %v544_v6, %v598_v4 }
 0x186   : > { %654 = vmatprep.subr.bf16.mxu1 %v630_v13 }
 0x187   : > { %v582_v15 = vpack.c.bf16 %v580_v11, %v580_v11  ;;  %v583_v19 = vpack.c.bf16 %v581_v12, %v581_v12  ;;  %655 = vmatpush1.bf16.msra.mxu1 %v626_v14 }
 0x189   : > { %991 = vmatprep.subr.msk.bf16.mxu1 %vm360_vm0, %v583_v19  ;;  %v643_v20 = vsel %vm360_vm0, %v582_v15, 0 }
 0x18b   : > { %657 = vmatpush1.bf16.msra.mxu1 %v643_v20 }
 0x18c   : > { %v636_v23 = vpop.permute.xlu0 %635 }
 0x18e   : > { %992 = vmatmul.mubr.msk.bf16.vlgmr.msra.gmra.mrb[0].mxu1 %vm638_vm11, %v427_v22 }
 0x261   : > { %v682_v25 = vpop.f32.mrb[0].mxu1 }
 0x262   : > { %v1298_v26 = vadd.f32 %v682_v25, %v636_v23  ;;  %v684_v29 = vpop.f32.mrb[1].mxu1 }
 0x263   : > { %v1300_v32 = vadd.f32 %v684_v29, %v636_v23  ;;  %v686_v34 = vpop.f32.mrb[2].mxu1 }
 0x264   : > { %v687_v37 = vpop.f32.mrb[3].mxu1  ;;  %700 = vrot.lane.b32.xlu1 %v1298_v26, %s1031_s22 }
 0x265   : > { %702 = vrot.lane.b32.xlu0 %v1300_v32, %s1031_s22 }
 0x268   : > { %690 = vrot.lane.b32.xlu1 %v1298_v26, %s1030_s21 }
 0x269   : > { %692 = vrot.lane.b32.xlu0 %v1300_v32, %s1030_s21 }
 0x26c   : > { %720 = vrot.lane.b32.xlu1 %v1298_v26, %s1032_s23 }
 0x26d   : > { %722 = vrot.lane.b32.xlu0 %v1300_v32, %s1032_s23  ;;  %s999_s23 = sshll.u32 %s1421_s10, 3 }
 0x270   : > { %710 = vrot.lane.b32.xlu1 %v1298_v26, %s1033_s24 }
 0x271   : > { %712 = vrot.lane.b32.xlu0 %v1300_v32, %s1033_s24 }
 0x274   : > { %732 = vrot.lane.b32.xlu1 %v1298_v26, %s1034_s25 }
 0x275   : > { %734 = vrot.lane.b32.xlu0 %v1300_v32, %s1034_s25 }
 0x278   : > { %752 = vrot.lane.b32.xlu1 %v1298_v26, %s1035_s26 }
 0x279   : > { %754 = vrot.lane.b32.xlu0 %v1300_v32, %s1035_s26  ;;  %s339_s26 = scalar_lea.vmem %s1418_s8, %s999_s23 }
 0x27c   : > { %742 = vrot.lane.b32.xlu1 %v1298_v26, %s1036_s27 }
 0x27d   : > { %744 = vrot.lane.b32.xlu0 %v1300_v32, %s1036_s27 }
 0x280   : > { %762 = vrot.lane.b32.xlu1 %v1298_v26, %s1037_s28 }
 0x281   : > { %764 = vrot.lane.b32.xlu0 %v1300_v32, %s1037_s28  ;;  %s343_s28 = scalar_lea.vmem %s1419_s9, %s999_s23 }
 0x2d6   : > { %v701_v38 = vpop.permute.xlu1 %700 }
 0x2d7   : > { %v703_v39 = vpop.permute.xlu0 %702 }
 0x2d8   : > { %v704_v40 = vsel %vm453_vm3, %v701_v38, %v703_v39  ;;  %v705_v42 = vsel %vm453_vm3, %v703_v39, %v701_v38 }
 0x2d9   : > { %v706_v43 = vmul.f32 %v705_v42, %v1169_v35  ;;  %v707_v45 = vmul.f32 %v704_v40, %v1172_v36 }
 0x2da   : > { %v691_v46 = vpop.permute.xlu1 %690 }
 0x2db   : > { %v708_v27 = vpack.c.bf16 %v706_v43, %v706_v43  ;;  %v709_v47 = vpack.c.bf16 %v707_v45, %v707_v45  ;;  %v693_v48 = vpop.permute.xlu0 %692 }
 0x2dc   : > { %v694_v50 = vsel %vm434_vm4, %v691_v46, %v693_v48  ;;  %v695_v51 = vsel %vm434_vm4, %v693_v48, %v691_v46 }
 0x2dd   : > { %v696_v52 = vmul.f32 %v695_v51, %v1180_v41  ;;  %v697_v53 = vmul.f32 %v694_v50, %v1185_v44  ;;  %v774_v24 = vrot.slane %v708_v27, 4  ;;  %v775_v58 = vrot.slane %v709_v47, 4 }
 0x2de   : > { %v721_v54 = vpop.permute.xlu1 %720 }
 0x2df   : > { %v698_v35 = vpack.c.bf16 %v696_v52, %v696_v52  ;;  %v699_v59 = vpack.c.bf16 %v697_v53, %v697_v53  ;;  %v723_v36 = vpop.permute.xlu0 %722 }
 0x2e0   : > { %v724_v60 = vsel %vm491_vm5, %v721_v54, %v723_v36  ;;  %v725_v61 = vsel %vm491_vm5, %v723_v36, %v721_v54 }
 0x2e1   : > { %v726_v30 = vmul.f32 %v725_v61, %v1197_v55  ;;  %v727_v31 = vmul.f32 %v724_v60, %v1200_v56  ;;  %v794_v41 = vsel %vm360_vm0, %v699_v59, %v775_v58  ;;  %v790_v44 = vsel %vm360_vm0, %v698_v35, %v774_v24 }
 0x2e2   : > { %829 = vmatprep.subr.bf16.mxu0 %v794_v41  ;;  %v711_v62 = vpop.permute.xlu1 %710 }
 0x2e3   : > { %v728_v63 = vpack.c.bf16 %v726_v30, %v726_v30  ;;  %v729_v3 = vpack.c.bf16 %v727_v31, %v727_v31  ;;  %v713_v4 = vpop.permute.xlu0 %712  ;;  %830 = vmatpush1.bf16.msra.mxu0 %v790_v44 }
 0x2e4   : > { %v714_v5 = vsel %vm472_vm6, %v711_v62, %v713_v4  ;;  %v715_v6 = vsel %vm472_vm6, %v713_v4, %v711_v62 }
 0x2e5   : > { %v716_v55 = vmul.f32 %v715_v6, %v1204_v57  ;;  %v717_v56 = vmul.f32 %v714_v5, %v1211_v1  ;;  %v778_v8 = vrot.slane %v728_v63, 4  ;;  %v779_v9 = vrot.slane %v729_v3, 4 }
 0x2e6   : > { %v733_v7 = vpop.permute.xlu1 %732 }
 0x2e7   : > { %v718_v10 = vpack.c.bf16 %v716_v55, %v716_v55  ;;  %v719_v11 = vpack.c.bf16 %v717_v56, %v717_v56  ;;  %v735_v12 = vpop.permute.xlu0 %734 }
 0x2e8   : > { %v736_v13 = vsel %vm512_vm7, %v733_v7, %v735_v12  ;;  %v737_v14 = vsel %vm512_vm7, %v735_v12, %v733_v7 }
 0x2e9   : > { %v738_v15 = vmul.f32 %v736_v13, %v1227_v16  ;;  %v739_v19 = vmul.f32 %v737_v14, %v1230_v17  ;;  %v802_v57 = vsel %vm360_vm0, %v719_v11, %v779_v9  ;;  %v798_v1 = vsel %vm360_vm0, %v718_v10, %v778_v8 }
 0x2ea   : > { %831 = vmatprep.subr.bf16.mxu0 %v802_v57  ;;  %v753_v20 = vpop.permute.xlu1 %752  ;;  %v731_v16 = vpack.c.bf16 %v1300_v32, %v1300_v32  ;;  %v730_v17 = vpack.c.bf16 %v1298_v26, %v1298_v26 }
 0x2eb   : > { %v740_v22 = vpack.c.bf16 %v738_v15, %v738_v15  ;;  %v741_v23 = vpack.c.bf16 %v739_v19, %v739_v19  ;;  %v755_v25 = vpop.permute.xlu0 %754  ;;  %832 = vmatpush1.bf16.msra.mxu0 %v798_v1 }
 0x2ec   : > { %v756_v29 = vsel %vm550_vm8, %v753_v20, %v755_v25  ;;  %v757_v34 = vsel %vm550_vm8, %v755_v25, %v753_v20 }
 0x2ed   : > { %v782_v37 = vrot.slane %v740_v22, 4  ;;  %v783_v38 = vrot.slane %v741_v23, 4  ;;  %v758_v39 = vmul.f32 %v756_v29, %v1234_v18  ;;  %v759_v40 = vmul.f32 %v757_v34, %v1241_v33 }
 0x2ee   : > { %v743_v42 = vpop.permute.xlu1 %742 }
 0x2ef   : > { %v760_v43 = vpack.c.bf16 %v758_v39, %v758_v39  ;;  %v761_v45 = vpack.c.bf16 %v759_v40, %v759_v40  ;;  %v745_v46 = vpop.permute.xlu0 %744  ;;  %v810_v27 = vsel %vm360_vm0, %v731_v16, %v783_v38  ;;  %v806_v47 = vsel %vm360_vm0, %v730_v17, %v782_v37 }
 0x2f0   : > { %v746_v32 = vsel %vm531_vm9, %v743_v42, %v745_v46  ;;  %v747_v26 = vsel %vm531_vm9, %v745_v46, %v743_v42  ;;  %833 = vmatprep.subr.bf16.mxu0 %v810_v27 }
 0x2f1   : > { %v748_v48 = vmul.f32 %v746_v32, %v1258_v49  ;;  %v749_v18 = vmul.f32 %v747_v26, %v1261_v21  ;;  %834 = vmatpush1.bf16.msra.mxu0 %v806_v47  ;;  %v786_v50 = vrot.slane %v760_v43, 4  ;;  %v787_v51 = vrot.slane %v761_v45, 4 }
 0x2f2   : > { %v763_v33 = vpop.permute.xlu1 %762 }
 0x2f3   : > { %v750_v52 = vpack.c.bf16 %v748_v48, %v748_v48  ;;  %v751_v53 = vpack.c.bf16 %v749_v18, %v749_v18  ;;  %v765_v54 = vpop.permute.xlu0 %764 }
 0x2f4   : > { %v766_v24 = vsel %vm569_vm10, %v763_v33, %v765_v54  ;;  %v767_v58 = vsel %vm569_vm10, %v765_v54, %v763_v33 }
 0x2f5   : > { %v768_v35 = vmul.f32 %v1277_v0, %v766_v24  ;;  %v769_v49 = vmul.f32 %v1282_v2, %v767_v58  ;;  %v818_v21 = vsel %vm360_vm0, %v751_v53, %v787_v51  ;;  %v814_v59 = vsel %vm360_vm0, %v750_v52, %v786_v50 }
 0x2f6   : > { %835 = vmatprep.subr.bf16.mxu0 %v818_v21 }
 0x2f7   : > { %v770_v36 = vpack.c.bf16 %v768_v35, %v768_v35  ;;  %v771_v60 = vpack.c.bf16 %v769_v49, %v769_v49  ;;  %836 = vmatpush1.bf16.msra.mxu0 %v814_v59 }
 0x2f9   : > { %993 = vmatprep.subr.msk.bf16.mxu0 %vm360_vm0, %v771_v60  ;;  %v824_v61 = vsel %vm360_vm0, %v770_v36, 0 }
 0x2fb   : > { %838 = vmatpush1.bf16.msra.mxu0 %v824_v61 }
 0x2fe   : > { %994 = vmatmul.mubr.msk.bf16.vlgmr.msra.gmra.mrb[4].mxu0 %vm638_vm11, %v689_v28 }
 0x3d1   : > { %v863_v0 = vpop.f32.mrb[4].mxu0 }
 0x3d2   : > { %v865_v2 = vpop.f32.mrb[5].mxu0  ;;  %v882_v30 = vmul.f32 %v863_v0, %v863_v0 }
 0x3d3   : > { %v1000_v31 = vpack.c.bf16 %v865_v2, %v863_v0  ;;  %v867_v41 = vpop.f32.mrb[6].mxu0  ;;  %v879_v44 = vadd.f32 %v865_v2, %v863_v0  ;;  %v883_v62 = vmul.f32 %v865_v2, %v865_v2 }
 0x3d4   : > { %v868_v63 = vpop.f32.mrb[7].mxu0 }
 0x3d5   : > { %878 = vst [vmem:[%s339_s26] sm:$0xff] %v1000_v31  ;;  %880 = vadd.xlane.f32.xlu1 %v879_v44  ;;  %v884_v3 = vadd.f32 %v883_v62, %v882_v30 }
 0x3d7   : > { %885 = vadd.xlane.f32.xlu0 %v884_v3 }
 0x462   : > { %v881_v4 = vpop.xlane.xlu1 %880 }
 0x464   : > { %v886_v5 = vpop.xlane.xlu0 %885 }
 0x465   : > { %v888_v6 = vsel %vm887_vm12, %v881_v4, %v886_v5 }
 0x466   : > { %v890_v55 = vsel %vm889_vm13, %v888_v6, 0.0 }
 0x467   : > { %891 = vst [vmem:[%s343_s28] sm:$0xff] %v890_v55 }
 0x468 PF: > { %s20_s30 = sadd.s32 1, %s1026_s30  }
 0x469   : > { %p17_p4 = scmp.ge.s32.totalorder %s20_s30, 4  }
 0x46b   :  { %19 = sbr.rel (!%p17_p4) target bundleno = 1 (0x1), region = 94 }

</bundles_post_ra>
